<compile_context>
chip_gen: v5e
topology: v5e:2x2
jax: 0.10.0
libtpu: 0.0.40
codegen_flags: <defaults>
</compile_context>

<pallas_src>
import math

import jax
import jax.numpy as jnp
from jax.experimental import pallas as pl
from jax.experimental.pallas import tpu as pltpu

K = 10  # hidden width, matches `k = 10` in training.py


def _round_up(n, m):
    return ((n + m - 1) // m) * m


def _discriminator_kernel(x_ref, w1_ref, b1_ref, w2_ref, b2_ref, w3_ref, b3_ref,
                          o_ref):
    # x: (IN, TILE_B) feature-major block; batch on lanes.
    x = x_ref[...]

    # Layer 1: (K, IN) @ (IN, TILE_B) + (K, 1)  -> ReLU
    l1 = jnp.dot(w1_ref[...], x, preferred_element_type=jnp.float32) + b1_ref[...]
    h1 = jnp.maximum(l1, 0.0)

    # Layer 2: (K, K) @ (K, TILE_B) + (K, 1)  -> ReLU
    l2 = jnp.dot(w2_ref[...], h1, preferred_element_type=jnp.float32) + b2_ref[...]
    h2 = jnp.maximum(l2, 0.0)

    # Layer 3: (1, K) @ (K, TILE_B) + (1, 1)  -> sigmoid  (lane-dense store)
    l3 = jnp.dot(w3_ref[...], h2, preferred_element_type=jnp.float32) + b3_ref[...]
    o_ref[...] = jax.nn.sigmoid(l3).astype(o_ref.dtype)


def discriminator_forward(x, params, *, tile_b=512, compute_dtype=jnp.float32):
    """Forward pass of the Discriminator.

    x: (B, input_length) float32.  params: PyTorch-layout weights/biases.
    Returns (B, 1) float32, matching `sigmoid(l3)` of the reference module.
    `compute_dtype=jnp.bfloat16` halves HBM bytes for the x/weight stream
    (accumulation stays f32).
    """
    B, in_len = x.shape

    # Feature-major layout: batch on the lane (last) axis.  Wrapper-side
    # transpose/reshape is layout plumbing, not compute hoisting.
    x_fm = x.T.astype(compute_dtype)                       # (IN, B)

    # PyTorch weights are (out, in) == exactly the feature-major operand.
    w1 = params["w1"].astype(compute_dtype)                # (K, IN)
    w2 = params["w2"].astype(compute_dtype)                # (K, K)
    w3 = params["w3"].astype(compute_dtype)                # (1, K)
    # Biases as (out, 1) columns: broadcast over the lane/batch axis, kept f32.
    b1 = params["b1"].reshape(K, 1).astype(jnp.float32)
    b2 = params["b2"].reshape(K, 1).astype(jnp.float32)
    b3 = params["b3"].reshape(1, 1).astype(jnp.float32)

    # Batch tiling: tile must be a multiple of 128 lanes; pad B up to the grid.
    tile_b = max(128, _round_up(min(tile_b, _round_up(B, 128)), 128))
    b_pad = _round_up(B, tile_b)
    if b_pad != B:
        x_fm = jnp.pad(x_fm, ((0, 0), (0, b_pad - B)))
    grid = (b_pad // tile_b,)

    const = lambda i: (0, 0)  # weights/biases: same block every step -> stay resident

    out_fm = pl.pallas_call(
        _discriminator_kernel,
        out_shape=jax.ShapeDtypeStruct((1, b_pad), jnp.float32),
        grid=grid,
        in_specs=[
            pl.BlockSpec((in_len, tile_b), lambda i: (0, i)),   # x  (streamed/pipelined)
            pl.BlockSpec((K, in_len), const),                   # w1 (resident)
            pl.BlockSpec((K, 1), const),                        # b1
            pl.BlockSpec((K, K), const),                        # w2
            pl.BlockSpec((K, 1), const),                        # b2
            pl.BlockSpec((1, K), const),                        # w3
            pl.BlockSpec((1, 1), const),                        # b3
        ],
        out_specs=pl.BlockSpec((1, tile_b), lambda i: (0, i)),  # lane-dense output
        compiler_params=pltpu.CompilerParams(
            dimension_semantics=("parallel",)),
    )(x_fm, w1, b1, w2, b2, w3, b3)

    # Back to the PyTorch (B, 1) convention.
    return out_fm[0, :B].reshape(B, 1)


def init_params(key, input_length):
    """Deterministic init matching PyTorch nn.Linear default U(-1/sqrt(fan_in), +)."""
    ks = jax.random.split(key, 6)

    def lin(kw, kb, fan_in, fan_out):
        bound = 1.0 / math.sqrt(fan_in)
        w = jax.random.uniform(kw, (fan_out, fan_in), jnp.float32, -bound, bound)
        b = jax.random.uniform(kb, (fan_out,), jnp.float32, -bound, bound)
        return w, b

    w1, b1 = lin(ks[0], ks[1], input_length, K)
    w2, b2 = lin(ks[2], ks[3], K, K)
    w3, b3 = lin(ks[4], ks[5], K, 1)
    return {"w1": w1, "b1": b1, "w2": w2, "b2": b2, "w3": w3, "b3": b3}


def _reference_forward(x, params):
    """Pure-JAX reference replicating the PyTorch forward."""
    l1 = x @ params["w1"].T + params["b1"]
    l2 = jnp.maximum(l1, 0.0) @ params["w2"].T + params["b2"]
    l3 = jnp.maximum(l2, 0.0) @ params["w3"].T + params["b3"]
    return jax.nn.sigmoid(l3)


if __name__ == "__main__":
    key = jax.random.PRNGKey(0)
    k_param, k_x, k_x2 = jax.random.split(key, 3)

    input_length = 8  # small binary-sequence length typical for this GAN example
    params = init_params(k_param, input_length)

    # Small-shape check (batch=2): exercises padding of a partial batch tile.
    x_small = jax.random.uniform(k_x, (2, input_length), jnp.float32)
    out = jax.block_until_ready(discriminator_forward(x_small, params))
    ref = _reference_forward(x_small, params)
    assert out.shape == (2, 1), out.shape
    assert jnp.allclose(out, ref, atol=1e-5, rtol=1e-5), (out, ref)

    # Multi-step grid check (batch=300, tile=128 -> grid of 3, last tile padded).
    x_big = jax.random.uniform(k_x2, (300, input_length), jnp.float32)
    out_big = jax.block_until_ready(
        discriminator_forward(x_big, params, tile_b=128))
    ref_big = _reference_forward(x_big, params)
    assert out_big.shape == (300, 1), out_big.shape
    assert jnp.allclose(out_big, ref_big, atol=1e-5, rtol=1e-5)

    # bf16 x/weight stream (halves HBM bytes at large batch), f32 accumulation.
    out_bf16 = jax.block_until_ready(
        discriminator_forward(x_big, params, tile_b=128,
                              compute_dtype=jnp.bfloat16))
    assert jnp.allclose(out_bf16, ref_big, atol=5e-2, rtol=5e-2)

    print("KERNEL_OK")
</pallas_src>

<mosaic_0001>
module attributes {stable_mosaic.version = 11 : i64} {
  func.func @_discriminator_kernel(%arg0: i32, %arg1: memref<8x128xf32, #tpu.memory_space<vmem>>, %arg2: memref<10x8xf32, #tpu.memory_space<vmem>>, %arg3: memref<10x1xf32, #tpu.memory_space<vmem>>, %arg4: memref<10x10xf32, #tpu.memory_space<vmem>>, %arg5: memref<10x1xf32, #tpu.memory_space<vmem>>, %arg6: memref<1x10xf32, #tpu.memory_space<vmem>>, %arg7: memref<1x1xf32, #tpu.memory_space<vmem>>, %arg8: memref<1x128xf32, #tpu.memory_space<vmem>>) attributes {dimension_semantics = [#tpu.dimension_semantics<parallel>], iteration_bounds = array<i64: 1>, scalar_prefetch = 0 : i64, scratch_operands = 0 : i64, tpu.core_type = #tpu.core_type<tc>, window_params = [{transform_indices = @transform_0, window_bounds = array<i64: 8, 128>}, {pipeline_mode = #tpu.pipeline_mode<synchronous>, transform_indices = @transform_1, window_bounds = array<i64: 10, 8>}, {pipeline_mode = #tpu.pipeline_mode<synchronous>, transform_indices = @transform_2, window_bounds = array<i64: 10, 1>}, {pipeline_mode = #tpu.pipeline_mode<synchronous>, transform_indices = @transform_3, window_bounds = array<i64: 10, 10>}, {pipeline_mode = #tpu.pipeline_mode<synchronous>, transform_indices = @transform_4, window_bounds = array<i64: 10, 1>}, {pipeline_mode = #tpu.pipeline_mode<synchronous>, transform_indices = @transform_5, window_bounds = array<i64: 1, 10>}, {pipeline_mode = #tpu.pipeline_mode<synchronous>, transform_indices = @transform_6, window_bounds = array<i64: 1, 1>}, {transform_indices = @transform_7, window_bounds = array<i64: 1, 128>}]} {
    %c0 = arith.constant 0 : index
    %c0_0 = arith.constant 0 : index
    %0 = vector.load %arg1[%c0, %c0_0] : memref<8x128xf32, #tpu.memory_space<vmem>>, vector<8x128xf32>
    %c0_1 = arith.constant 0 : index
    %c0_2 = arith.constant 0 : index
    %1 = vector.load %arg2[%c0_1, %c0_2] : memref<10x8xf32, #tpu.memory_space<vmem>>, vector<10x8xf32>
    %cst = arith.constant dense<0.000000e+00> : vector<10x128xf32>
    %2 = tpu.matmul %1, %0, %cst {dimension_numbers = #tpu.dot_dimension_numbers<[1], [0], [0], [1], [0, 0, 1, 1], [], []>} : vector<10x8xf32>, vector<8x128xf32>, vector<10x128xf32> -> vector<10x128xf32>
    %c0_3 = arith.constant 0 : index
    %c0_4 = arith.constant 0 : index
    %3 = vector.load %arg3[%c0_3, %c0_4] : memref<10x1xf32, #tpu.memory_space<vmem>>, vector<10x1xf32>
    %4 = vector.broadcast %3 : vector<10x1xf32> to vector<10x128xf32>
    %5 = arith.addf %2, %4 : vector<10x128xf32>
    %cst_5 = arith.constant 0.000000e+00 : f32
    %6 = vector.broadcast %cst_5 : f32 to vector<10x128xf32>
    %7 = arith.maximumf %5, %6 : vector<10x128xf32>
    %c0_6 = arith.constant 0 : index
    %c0_7 = arith.constant 0 : index
    %8 = vector.load %arg4[%c0_6, %c0_7] : memref<10x10xf32, #tpu.memory_space<vmem>>, vector<10x10xf32>
    %cst_8 = arith.constant dense<0.000000e+00> : vector<10x128xf32>
    %9 = tpu.matmul %8, %7, %cst_8 {dimension_numbers = #tpu.dot_dimension_numbers<[1], [0], [0], [1], [0, 0, 1, 1], [], []>} : vector<10x10xf32>, vector<10x128xf32>, vector<10x128xf32> -> vector<10x128xf32>
    %c0_9 = arith.constant 0 : index
    %c0_10 = arith.constant 0 : index
    %10 = vector.load %arg5[%c0_9, %c0_10] : memref<10x1xf32, #tpu.memory_space<vmem>>, vector<10x1xf32>
    %11 = vector.broadcast %10 : vector<10x1xf32> to vector<10x128xf32>
    %12 = arith.addf %9, %11 : vector<10x128xf32>
    %cst_11 = arith.constant 0.000000e+00 : f32
    %13 = vector.broadcast %cst_11 : f32 to vector<10x128xf32>
    %14 = arith.maximumf %12, %13 : vector<10x128xf32>
    %c0_12 = arith.constant 0 : index
    %c0_13 = arith.constant 0 : index
    %15 = vector.load %arg6[%c0_12, %c0_13] : memref<1x10xf32, #tpu.memory_space<vmem>>, vector<1x10xf32>
    %cst_14 = arith.constant dense<0.000000e+00> : vector<1x128xf32>
    %16 = tpu.matmul %15, %14, %cst_14 {dimension_numbers = #tpu.dot_dimension_numbers<[1], [0], [0], [1], [0, 0, 1, 1], [], []>} : vector<1x10xf32>, vector<10x128xf32>, vector<1x128xf32> -> vector<1x128xf32>
    %c0_15 = arith.constant 0 : index
    %c0_16 = arith.constant 0 : index
    %17 = vector.load %arg7[%c0_15, %c0_16] : memref<1x1xf32, #tpu.memory_space<vmem>>, vector<1x1xf32>
    %18 = vector.broadcast %17 : vector<1x1xf32> to vector<1x128xf32>
    %19 = arith.addf %16, %18 : vector<1x128xf32>
    %20 = arith.negf %19 : vector<1x128xf32>
    %21 = math.exp %20 : vector<1x128xf32>
    %cst_17 = arith.constant 1.000000e+00 : f32
    %22 = vector.broadcast %cst_17 : f32 to vector<1x128xf32>
    %23 = arith.addf %22, %21 : vector<1x128xf32>
    %24 = arith.divf %22, %23 : vector<1x128xf32>
    %c0_18 = arith.constant 0 : index
    %c0_19 = arith.constant 0 : index
    %25 = vector.load %arg8[%c0_18, %c0_19] : memref<1x128xf32, #tpu.memory_space<vmem>>, vector<1x128xf32>
    tpu.vector_store %arg8[%c0_18, %c0_19], %24 {strides = array<i32>} : memref<1x128xf32, #tpu.memory_space<vmem>>, vector<1x128xf32>,
    return
  }
  func.func @transform_0(%arg0: i32) -> (i32, i32) {
    %c0_i32 = arith.constant 0 : i32
    %c0_i32_0 = arith.constant 0 : i32
    return %c0_i32, %arg0 : i32, i32
  }
  func.func @transform_1(%arg0: i32) -> (i32, i32) {
    %c0_i32 = arith.constant 0 : i32
    %c0_i32_0 = arith.constant 0 : i32
    %c0_i32_1 = arith.constant 0 : i32
    return %c0_i32, %c0_i32_0 : i32, i32
  }
  func.func @transform_2(%arg0: i32) -> (i32, i32) {
    %c0_i32 = arith.constant 0 : i32
    %c0_i32_0 = arith.constant 0 : i32
    %c0_i32_1 = arith.constant 0 : i32
    return %c0_i32, %c0_i32_0 : i32, i32
  }
  func.func @transform_3(%arg0: i32) -> (i32, i32) {
    %c0_i32 = arith.constant 0 : i32
    %c0_i32_0 = arith.constant 0 : i32
    %c0_i32_1 = arith.constant 0 : i32
    return %c0_i32, %c0_i32_0 : i32, i32
  }
  func.func @transform_4(%arg0: i32) -> (i32, i32) {
    %c0_i32 = arith.constant 0 : i32
    %c0_i32_0 = arith.constant 0 : i32
    %c0_i32_1 = arith.constant 0 : i32
    return %c0_i32, %c0_i32_0 : i32, i32
  }
  func.func @transform_5(%arg0: i32) -> (i32, i32) {
    %c0_i32 = arith.constant 0 : i32
    %c0_i32_0 = arith.constant 0 : i32
    %c0_i32_1 = arith.constant 0 : i32
    return %c0_i32, %c0_i32_0 : i32, i32
  }
  func.func @transform_6(%arg0: i32) -> (i32, i32) {
    %c0_i32 = arith.constant 0 : i32
    %c0_i32_0 = arith.constant 0 : i32
    %c0_i32_1 = arith.constant 0 : i32
    return %c0_i32, %c0_i32_0 : i32, i32
  }
  func.func @transform_7(%arg0: i32) -> (i32, i32) {
    %c0_i32 = arith.constant 0 : i32
    %c0_i32_0 = arith.constant 0 : i32
    return %c0_i32, %arg0 : i32, i32
  }
}

</mosaic_0001>

<bundles_post_ra>
// kernel: tpu_custom_call.1
= control target key start
LH: loop header
LB: loop body
LE: loop exit
PB: predicated region body
PF: predicated region fallthrough
CT: control target
= control target key end

     0   :  { %s325_s0 = inlined_call_operand.vmem [shape: f32[8,128], index: 0, kind: input, shape index: {}]   ;;  %s326_s1 = inlined_call_operand.vmem [shape: f32[10,8], index: 1, kind: input, shape index: {}]   ;;  %s327_s2 = inlined_call_operand.vmem [shape: f32[10,1], index: 2, kind: input, shape index: {}]   ;;  %s328_s3 = inlined_call_operand.vmem [shape: f32[10,10], index: 3, kind: input, shape index: {}]   ;;  %s329_s4 = inlined_call_operand.vmem [shape: f32[10,1], index: 4, kind: input, shape index: {}]   ;;  %s330_s5 = inlined_call_operand.vmem [shape: f32[1,10], index: 5, kind: input, shape index: {}]   ;;  %s331_s6 = inlined_call_operand.<no memory space> [shape: f32[1,1], index: 6, kind: input, shape index: {}]   ;;  %s332_s7 = inlined_call_operand.hbm [shape: f32[1,128], index: 7, kind: output, shape index: {}]  }
   0x1   :  { %v12_v0 = vstv %s331_s6 }
   0x2   :  { %13 = vst [vmem:[#allocation2] sm:$0x1] %v12_v0 }
   0x3   :  { %v29_v1 = vld [vmem:[%s325_s0] sm:$0xff]  ;;  %vm44_vm0 = vcmask 64512   ;;  %v33_v3 = vld [vmem:[%s327_s2 + $0x8] sm:$0x3]  ;;  %v241_v4 = vmov 0  }
   0x4   :  { %v30_v2 = vld [vmem:[%s326_s1] sm:$0xff]  ;;  %66 = vmatpush.msra.mxu0 %v29_v1  ;;  %208 = vset.pattern.permute.xlu0 %v241_v4 }
   0x5   :  { %14 = vsyncpa [#allocation4], 0  ;;  %196 = vmatmul.msk.f32.vlgmr.msra.gmra.mxu0 %vm44_vm0, %v30_v2  ;;  %41 = vperm.xlu0 %208, %v33_v3   ;;  %v31_v5 = vld [vmem:[%s326_s1 + $0x8] sm:$0x3]  ;;  %v32_v6 = vld [vmem:[%s327_s2] sm:$0xff]  ;;  %vm97_vm1 = vcmask 1041408  }
   0x6   :  { %209 = vset.pattern.permute.xlu1 %v241_v4  ;;  %210 = vset.pattern.permute.xlu2 %v241_v4  ;;  %v79_v7 = vld [vmem:[%s329_s4 + $0x8] sm:$0x3]  ;;  %v78_v8 = vld [vmem:[%s329_s4] sm:$0xff]  ;;  %vm90_vm2 = vcmask 80896   ;;  %s187_s20 = sshll.u32 %s332_s7, 4  ;;  %s188_s20 = int_to_ptr.hbm [resolvable:$true] %s187_s20 }
   0x7   :  { %87 = vperm.xlu1 %209, %v79_v7   ;;  %v76_v17 = vld [vmem:[%s328_s3] sm:$0xff]  ;;  %v77_v18 = vld [vmem:[%s328_s3 + $0x8] sm:$0x3] }
   0x8   :  { %v126_v28 = vld [vmem:[%s330_s5] sm:$0x1]  ;;  %s242_s5 = smov [#allocation3]  }
   0x9   :  { %v127_v19 = vld [vmem:[#allocation2] sm:$0x1]  ;;  %s185_s17 = sshll.u32 %s242_s5, 4  ;;  %s186_s17 = int_to_ptr.vmem [resolvable:$true] %s185_s17 }
   0xa   :  { %130 = vperm.xlu2 %210, %v127_v19  }
   0xd   :  { %197 = vmatmul.msk.f32.gmra.mxu0 %vm44_vm0, %v31_v5  ;;  %36 = vperm.xlu0 %208, %v32_v6  }
   0xf   :  { %82 = vperm.xlu1 %209, %v78_v8  }
  0x64   :  { %v131_v29 = vpop.permute.xlu2 %130 }
  0x65   :  { %v133_v30 = vperm.slane %v131_v29, 0 }
  0x77   :  { %v42_v9 = vpop.permute.xlu0 %41 }
  0x79   :  { %v88_v20 = vpop.permute.xlu1 %87 }
  0x7f   :  { %v37_v11 = vpop.permute.xlu0 %36 }
  0x81   :  { %v83_v21 = vpop.permute.xlu1 %82 }
  0x82   :  { %v68_v10 = vpop.f32.mrf.mxu0 }
  0x83   :  { %v69_v13 = vadd.f32 %v68_v10, %v37_v11 }
  0x85   :  { %v74_v16 = vmax.f32 %v69_v13, 0.0 }
  0x8a   :  { %v71_v12 = vpop.f32.mrf.mxu0 }
  0x8b   :  { %v72_v14 = vadd.f32 %v71_v12, %v42_v9 }
  0x8d   :  { %v75_v15 = vmax.f32 %v72_v14, 0.0 }
  0x8f   :  { %198 = vmatpush.msk.msra.mxu1 %vm97_vm1, %v75_v15  ;;  %204 = vmatpush.msk.msra.mxu3 %vm97_vm1, %v75_v15 }
  0x91   :  { %116 = vmatpush.msra.mxu1 %v74_v16  ;;  %205 = vmatpush.msra.mxu3 %v74_v16 }
  0x92   :  { %199 = vmatmul.msk.f32.vlgmr.msra.gmra.mxu1 %vm90_vm2, %v76_v17  ;;  %200 = vmatmul.msk.f32.vlgmr.msra.gmra.mxu3 %vm90_vm2, %v77_v18 }
 0x10f   :  { %v118_v22 = vpop.f32.mrf.mxu1 }
 0x110   :  { %v119_v24 = vadd.f32 %v118_v22, %v83_v21 }
 0x112   :  { %v124_v27 = vmax.f32 %v119_v24, 0.0 }
 0x115   :  { %v121_v23 = vpop.f32.mrf.mxu3 }
 0x116   :  { %v122_v25 = vadd.f32 %v121_v23, %v88_v20 }
 0x118   :  { %v125_v26 = vmax.f32 %v122_v25, 0.0 }
 0x11a   :  { %201 = vmatpush.msk.msra.mxu2 %vm97_vm1, %v125_v26 }
 0x11c   :  { %155 = vmatpush.msra.mxu2 %v124_v27 }
 0x11d   :  { %202 = vmatmul.msk.f32.vlgmr.msra.gmra.mxu2 %vm90_vm2, %v126_v28 }
 0x1a0   :  { %v157_v31 = vpop.f32.mrf.mxu2 }
 0x1a1   :  { %v158_v32 = vadd.f32 %v157_v31, %v133_v30 }
 0x1a3   :  { %v203_v33 = vmul.f32 -1.442695, %v158_v32 }
 0x1a5   :  { %211 = vpow2.f32 %v203_v33 }
 0x1ab   :  { %v212_v34 = vpop.eup %211 }
 0x1ac   :  { %v163_v35 = vadd.f32 1.0, %v212_v34 }
 0x1ae   :  { %213 = vrcp.f32 %v163_v35  ;;  %v175_v39 = vand.u32 2147483648, %v163_v35  ;;  %v173_v41 = vand.u32 2147483647, %v163_v35  ;;  %vm169_vm4 = vweird.f32 %v163_v35 }
 0x1b0   :  { %v176_v43 = vor.u32 1.1754944e-38, %v175_v39  ;;  %vm174_vm6 = vcmp.eq.f32.partialorder %v173_v41, 8.507059e+37 }
 0x1b4   :  { %v214_v36 = vpop.eup %213 }
 0x1b5   :  { %v165_v37 = vmul.f32 %v214_v36, %v163_v35  ;;  %vm170_vm3 = vweird.f32 %v214_v36 }
 0x1b6   :  { %vm171_vm5 = vmor %vm169_vm4, %vm170_vm3 }
 0x1b7   :  { %v166_v38 = vsub.f32 1.0, %v165_v37 }
 0x1b9   :  { %v167_v40 = vmul.f32 %v214_v36, %v166_v38 }
 0x1bb   :  { %v168_v42 = vadd.f32 %v214_v36, %v167_v40 }
 0x1bd   :  { %v172_v44 = vsel %vm171_vm5, %v214_v36, %v168_v42 }
 0x1be   :  { %v177_v45 = vsel %vm174_vm6, %v176_v43, %v172_v44 }
 0x1bf   :  { %179 = vst [vmem:[#allocation3] sm:$0x1] %v177_v45 }
 0x1c0   :  { %190 = dma.vmem_to_hbm [thread:$0]  %s186_s17, 16, %s188_s20, [#allocation4]  }
 0x1c1   :  { %239 = dma.done.wait [#allocation4], 16  }
 0x1c2   :  { %240 = vsyncadd [#allocation4], 4294967280 }
 0x1c3   :  { %195 = vsyncpa [#allocation4], 1 }

</bundles_post_ra>
